<compile_context>
chip_gen: v6e
topology: v6e:2x2x1
jax: 0.10.0
libtpu: 0.0.40
codegen_flags: <defaults>
</compile_context>

<pallas_src>
import functools

import jax
import jax.numpy as jnp
from jax.experimental import pallas as pl
from jax.experimental.pallas import tpu as pltpu


BN_EPS = 1e-5
NORM_CLAMP_MIN = 1e-8
_NORM_CLAMP_MIN_SQ = NORM_CLAMP_MIN * NORM_CLAMP_MIN

_SINGLE_BLOCK_MAX_BYTES = 1 * 1024 * 1024     # tiny inputs -> one block, no grid
_DEFAULT_VMEM_CAP = 64 * 1024 * 1024          # conservative fallback (v7x physical)


def _round_up(n, m):
    return ((n + m - 1) // m) * m


def _as_f32(v):
    return v if v.dtype == jnp.float32 else v.astype(jnp.float32)


def _vmem_capacity_bytes():
    """Physical VMEM of the local chip (128 MiB v5e/v6e, 64 MiB v7x)."""
    try:
        info = pltpu.get_tpu_info()
        cap = getattr(info, "vmem_capacity_bytes", None)
        if cap:
            return int(cap)
    except Exception:
        pass
    return _DEFAULT_VMEM_CAP


def _batchnorm(x, gamma, beta):
    # Training-mode BatchNorm1d: batch statistics, biased variance.
    mean = jnp.mean(x, axis=0, keepdims=True)
    var = jnp.mean((x - mean) ** 2, axis=0, keepdims=True)
    return (x - mean) * jax.lax.rsqrt(var + BN_EPS) * gamma + beta


def _l2_scale(x):
    # x / clamp(sqrt(sum(x^2)), 1e-8)  ==  x * rsqrt(max(sum(x^2), 1e-16))
    sq = jnp.sum(x * x, axis=1, keepdims=True)
    return x * jax.lax.rsqrt(jnp.maximum(sq, _NORM_CLAMP_MIN_SQ))


# ----------------------------- single-block path ----------------------------

def _etf_single_block_kernel(*refs, apply_bn):
    if apply_bn:
        x_ref, gamma_ref, beta_ref, o_ref = refs
    else:
        x_ref, o_ref = refs
    x = _as_f32(x_ref[...])
    if apply_bn:
        x = _batchnorm(x, _as_f32(gamma_ref[...]), _as_f32(beta_ref[...]))
    o_ref[...] = _l2_scale(x).astype(o_ref.dtype)


def _single_block_call(x, gamma2d, beta2d, apply_bn, vmem_cap):
    b, f = x.shape
    itemsize = jnp.dtype(x.dtype).itemsize
    kernel = functools.partial(_etf_single_block_kernel, apply_bn=apply_bn)
    full = pl.BlockSpec((b, f), lambda: (0, 0))
    row = pl.BlockSpec((1, f), lambda: (0, 0))
    in_specs = [full, row, row] if apply_bn else [full]
    args = (x, gamma2d, beta2d) if apply_bn else (x,)

    kwargs = {}
    needed = 3 * b * f * itemsize + (2 << 20)
    if needed > (12 << 20):      # only raise the scoped limit when actually needed
        kwargs["compiler_params"] = pltpu.CompilerParams(
            vmem_limit_bytes=int(min(max(needed, 32 << 20), vmem_cap - (8 << 20))))

    return pl.pallas_call(
        kernel,
        out_shape=jax.ShapeDtypeStruct((b, f), x.dtype),
        in_specs=in_specs,
        out_specs=full,
        **kwargs,
    )(*args)


# ------------------------ batch-tiled two-pass paths ------------------------

def _etf_batch_tiled_kernel(x_ref, gamma_ref, beta_ref, o_ref, *scratch,
                            resident, inv_b):
    """grid (2, nB): pass 0 = per-feature sum / sumsq reduction,
    pass 1 = folded BN affine + row L2-normalize + write."""
    if resident:
        xcopy_ref, stats_ref = scratch     # xcopy: (nB, TB, F), stats: (2, F) f32
    else:
        (stats_ref,) = scratch

    p = pl.program_id(0)   # 0: accumulate stats, 1: apply + write
    i = pl.program_id(1)   # batch tile

    @pl.when(p == 0)
    def _():
        xv = x_ref[...]
        if resident:
            xcopy_ref[i] = xv              # stash raw tile in VMEM (no HBM re-read)
        xf = _as_f32(xv)
        s = jnp.sum(xf, axis=0, keepdims=True)
        s2 = jnp.sum(xf * xf, axis=0, keepdims=True)

        @pl.when(i == 0)
        def _():
            stats_ref[0:1, :] = s
            stats_ref[1:2, :] = s2

        @pl.when(i > 0)
        def _():
            stats_ref[0:1, :] = stats_ref[0:1, :] + s
            stats_ref[1:2, :] = stats_ref[1:2, :] + s2

    @pl.when(p == 1)
    def _():
        @pl.when(i == 0)
        def _():
            # Fold BN into a per-feature affine y = x*scale + shift and cache it
            # in the stats scratch, so later tiles skip the mean/var/rsqrt work.
            mean = stats_ref[0:1, :] * inv_b
            var = stats_ref[1:2, :] * inv_b - mean * mean        # biased variance
            rstd = jax.lax.rsqrt(var + BN_EPS)
            scale = _as_f32(gamma_ref[...]) * rstd
            shift = _as_f32(beta_ref[...]) - mean * scale
            stats_ref[0:1, :] = scale
            stats_ref[1:2, :] = shift

        xv = xcopy_ref[i] if resident else x_ref[...]
        xh = _as_f32(xv) * stats_ref[0:1, :] + stats_ref[1:2, :]
        sq = jnp.sum(xh * xh, axis=1, keepdims=True)             # full row in-tile
        o_ref[...] = (xh * jax.lax.rsqrt(jnp.maximum(sq, _NORM_CLAMP_MIN_SQ))
                      ).astype(o_ref.dtype)


def _batch_tiled_call(x_p, gamma2d, beta2d, *, tb, b_real, resident, vmem_cap):
    bp, f = x_p.shape
    n_b = bp // tb
    itemsize = jnp.dtype(x_p.dtype).itemsize

    kernel = functools.partial(_etf_batch_tiled_kernel,
                               resident=resident, inv_b=1.0 / float(b_real))

    if resident:
        # Pass 1 never reads x: pin the input block to the last pass-0 block so
        # no input DMAs are issued at all during pass 1.
        x_spec = pl.BlockSpec(
            (tb, f), lambda p, i: (i * (1 - p) + (n_b - 1) * p, 0))
    else:
        x_spec = pl.BlockSpec((tb, f), lambda p, i: (i, 0))
    gb_spec = pl.BlockSpec((1, f), lambda p, i: (0, 0))
    # Pass 0 pins a single resident output block (never written by the kernel),
    # so no garbage write-backs; pass 1 walks the tiles and writes each once.
    out_spec = pl.BlockSpec((tb, f), lambda p, i: (i * p, 0))

    scratch = [pltpu.VMEM((2, f), jnp.float32)]
    if resident:
        scratch = [pltpu.VMEM((n_b, tb, f), x_p.dtype)] + scratch

    tile_bytes = tb * f * itemsize
    scratch_bytes = (n_b * tile_bytes if resident else 0) + 8 * f * 4
    needed = scratch_bytes + 4 * tile_bytes + 8 * f * 4 + (4 << 20)
    vmem_limit = int(min(max(needed, 32 << 20), vmem_cap - (8 << 20)))

    reads = 1 if resident else 2
    cost = pl.CostEstimate(
        flops=int(10 * bp * f),
        transcendentals=int(bp + f),
        bytes_accessed=int((reads + 1) * bp * f * itemsize))

    return pl.pallas_call(
        kernel,
        out_shape=jax.ShapeDtypeStruct((bp, f), x_p.dtype),
        grid_spec=pltpu.PrefetchScalarGridSpec(
            num_scalar_prefetch=0,
            grid=(2, n_b),
            in_specs=[x_spec, gb_spec, gb_spec],
            out_specs=out_spec,
            scratch_shapes=scratch),
        compiler_params=pltpu.CompilerParams(
            # The pass axis is sequential; batch tiles are coupled through the
            # per-feature stats scratch, so both axes stay "arbitrary".
            # TODO(synk): v7x megacore — split the stats reduction per core
            # (or compute it in a separate call) and mark the apply pass
            # "parallel"; skipped here to keep one kernel for all generations.
            dimension_semantics=("arbitrary", "arbitrary"),
            vmem_limit_bytes=vmem_limit),
        cost_estimate=cost,
    )(x_p, gamma2d, beta2d)


def _pick_batch_tile(b, f, itemsize, tile_budget):
    """Rows per tile: 2 in + 2 out double-buffered (TB, F) tiles <= budget."""
    per_row = max(f * itemsize, 1)
    tb = tile_budget // (4 * per_row)
    tb = max((tb // 8) * 8, 8)
    tb = min(tb, _round_up(b, 8))
    # Prefer a tile that divides B exactly (avoids a wrapper-side zero-pad, i.e.
    # extra HBM traffic) as long as it doesn't shrink the tile too much.
    if b % 8 == 0 and b % tb != 0:
        t = tb
        while t > 8 and b % t != 0:
            t -= 8
        if b % t == 0 and t * 2 >= tb:
            tb = t
    return int(tb)


# --------------------------------- wrapper -----------------------------------

def etf_classifier_forward(x, gamma=None, beta=None, *,
                           force_path=None, batch_tile=None):
    """ETF_Classifier.forward.  x: (B, feat_in); gamma/beta: (feat_in,) BN affine.

    force_path in {None, "single", "resident", "streaming"} and batch_tile are
    test/benchmark knobs; the default picks a path from per-generation VMEM.
    """
    b, f = x.shape
    apply_bn = b > 1                       # static, mirrors `if x.size(0) > 1`
    itemsize = jnp.dtype(x.dtype).itemsize
    vmem_cap = _vmem_capacity_bytes()

    if apply_bn:
        if gamma is None:
            gamma = jnp.ones((f,), jnp.float32)
        if beta is None:
            beta = jnp.zeros((f,), jnp.float32)
        gamma2d = _as_f32(jnp.asarray(gamma)).reshape(1, f)
        beta2d = _as_f32(jnp.asarray(beta)).reshape(1, f)
    else:
        gamma2d = beta2d = None            # B == 1: never DMA gamma/beta

    bytes_x = b * f * itemsize
    resident_budget = (vmem_cap * 3) // 8  # BN intermediate VMEM scratch budget

    if force_path is not None and apply_bn:
        path = force_path
    elif not apply_bn or bytes_x <= _SINGLE_BLOCK_MAX_BYTES:
        path = "single"
    elif bytes_x <= resident_budget:
        path = "resident"                  # 1 read + 1 write of x
    else:
        path = "streaming"                 # 2 reads + 1 write of x

    if path == "single":
        return _single_block_call(x, gamma2d, beta2d, apply_bn, vmem_cap)

    resident = path == "resident"
    tile_budget = vmem_cap // 4 if resident else vmem_cap // 2
    tb = batch_tile if batch_tile is not None else _pick_batch_tile(
        b, f, itemsize, tile_budget)
    tb = max(8, (int(tb) // 8) * 8)
    bp = _round_up(b, tb)
    # Zero batch-padding (only when B % TB != 0): zero rows add 0 to the
    # per-feature sum/sumsq, and the real batch size is used for the mean.
    x_p = jnp.pad(x, ((0, bp - b), (0, 0))) if bp != b else x
    # TODO(synk): if F alone is so large that a single (8, F) tile exceeds VMEM,
    # an extra feature-tiling level would be needed; not implemented.
    out = _batch_tiled_call(x_p, gamma2d, beta2d, tb=tb, b_real=b,
                            resident=resident, vmem_cap=vmem_cap)
    return out[:b] if bp != b else out


# ----------------------------- module constants ------------------------------

def make_etf_matrix(key, feat_in, num_classes):
    """Deterministic ori_M from __init__ (not used by forward)."""
    a = jax.random.uniform(key, (feat_in, num_classes), dtype=jnp.float32)
    p, _ = jnp.linalg.qr(a)
    eye = jnp.eye(num_classes, dtype=jnp.float32)
    one = jnp.ones((num_classes, num_classes), dtype=jnp.float32)
    scale = jnp.sqrt(num_classes / (num_classes - 1.0))
    return scale * (p @ (eye - one / num_classes))


def _reference_forward(x, gamma, beta):
    if x.shape[0] > 1:
        mean = jnp.mean(x, axis=0, keepdims=True)
        var = jnp.mean((x - mean) ** 2, axis=0, keepdims=True)
        x = (x - mean) / jnp.sqrt(var + BN_EPS)
        x = x * gamma[None, :] + beta[None, :]
    norm = jnp.maximum(jnp.sqrt(jnp.sum(x * x, axis=1, keepdims=True)),
                       NORM_CLAMP_MIN)
    return x / norm


if __name__ == "__main__":
    key = jax.random.PRNGKey(0)
    k_x, k_m, k_t, k_g, k_b = jax.random.split(key, 5)

    batch, feat_in, num_classes = 8, 32, 8
    x = jax.random.normal(k_x, (batch, feat_in), dtype=jnp.float32)
    gamma = jnp.ones((feat_in,), dtype=jnp.float32)   # BatchNorm1d default init
    beta = jnp.zeros((feat_in,), dtype=jnp.float32)

    ori_M = make_etf_matrix(k_m, feat_in, num_classes)  # built in __init__, unused by forward
    # TODO(synk): gen_sparse_ETF / test_etf / reg_ETF are an Adam optimization
    # loop and training-loss computations outside the forward pass; not kernelized.

    # 1) B > 1, tiny: BN + L2-normalize via the single-block path.
    out = jax.block_until_ready(etf_classifier_forward(x, gamma, beta))
    ref = _reference_forward(x, gamma, beta)
    assert out.shape == (batch, feat_in)
    assert jnp.allclose(out, ref, atol=1e-5, rtol=1e-5)

    # 2) B == 1: BN skipped; gamma/beta never passed to the kernel.
    out1 = jax.block_until_ready(etf_classifier_forward(x[:1], gamma, beta))
    assert jnp.allclose(out1, _reference_forward(x[:1], gamma, beta),
                        atol=1e-5, rtol=1e-5)

    # 3) Batch-tiled, VMEM-resident (1R+1W) path, forced small for validation.
    xt = jax.random.normal(k_t, (32, 256), dtype=jnp.float32)
    gt = 1.0 + 0.1 * jax.random.normal(k_g, (256,), dtype=jnp.float32)
    bt = 0.05 * jax.random.normal(k_b, (256,), dtype=jnp.float32)
    reft = _reference_forward(xt, gt, bt)
    outr = jax.block_until_ready(
        etf_classifier_forward(xt, gt, bt, force_path="resident", batch_tile=8))
    assert jnp.allclose(outr, reft, atol=1e-5, rtol=1e-5)

    # 4) Batch-tiled streaming (2R+1W) fallback path.
    outs = jax.block_until_ready(
        etf_classifier_forward(xt, gt, bt, force_path="streaming", batch_tile=16))
    assert jnp.allclose(outs, reft, atol=1e-5, rtol=1e-5)

    # 5) Ragged batch (B not a multiple of the tile) exercises zero-padding.
    xr = xt[:27]
    outrr = jax.block_until_ready(
        etf_classifier_forward(xr, gt, bt, force_path="resident", batch_tile=8))
    assert jnp.allclose(outrr, _reference_forward(xr, gt, bt),
                        atol=1e-5, rtol=1e-5)

    print("KERNEL_OK")
</pallas_src>

<mosaic_0001>
module attributes {stable_mosaic.version = 11 : i64} {
  func.func @_etf_single_block_kernel(%arg0: memref<8x32xf32, #tpu.memory_space<vmem>>, %arg1: memref<1x32xf32, #tpu.memory_space<vmem>>, %arg2: memref<1x32xf32, #tpu.memory_space<vmem>>, %arg3: memref<8x32xf32, #tpu.memory_space<vmem>>) attributes {dimension_semantics = [], scalar_prefetch = 0 : i64, scratch_operands = 0 : i64, tpu.core_type = #tpu.core_type<tc>} {
    %c0 = arith.constant 0 : index
    %c0_0 = arith.constant 0 : index
    %0 = vector.load %arg0[%c0, %c0_0] : memref<8x32xf32, #tpu.memory_space<vmem>>, vector<8x32xf32>
    %c0_1 = arith.constant 0 : index
    %c0_2 = arith.constant 0 : index
    %1 = vector.load %arg1[%c0_1, %c0_2] : memref<1x32xf32, #tpu.memory_space<vmem>>, vector<1x32xf32>
    %c0_3 = arith.constant 0 : index
    %c0_4 = arith.constant 0 : index
    %2 = vector.load %arg2[%c0_3, %c0_4] : memref<1x32xf32, #tpu.memory_space<vmem>>, vector<1x32xf32>
    %cst = arith.constant dense<0.000000e+00> : vector<32xf32>
    %3 = vector.multi_reduction <add>, %0, %cst [0] : vector<8x32xf32> to vector<32xf32>
    %4 = vector.shape_cast %3 : vector<32xf32> to vector<1x32xf32>
    %cst_5 = arith.constant 8.000000e+00 : f32
    %5 = vector.broadcast %cst_5 : f32 to vector<1x32xf32>
    %6 = arith.divf %4, %5 : vector<1x32xf32>
    %7 = vector.broadcast %6 : vector<1x32xf32> to vector<8x32xf32>
    %8 = arith.subf %0, %7 : vector<8x32xf32>
    %9 = arith.mulf %8, %8 : vector<8x32xf32>
    %cst_6 = arith.constant dense<0.000000e+00> : vector<32xf32>
    %10 = vector.multi_reduction <add>, %9, %cst_6 [0] : vector<8x32xf32> to vector<32xf32>
    %11 = vector.shape_cast %10 : vector<32xf32> to vector<1x32xf32>
    %cst_7 = arith.constant 8.000000e+00 : f32
    %12 = vector.broadcast %cst_7 : f32 to vector<1x32xf32>
    %13 = arith.divf %11, %12 : vector<1x32xf32>
    %14 = vector.broadcast %6 : vector<1x32xf32> to vector<8x32xf32>
    %15 = arith.subf %0, %14 : vector<8x32xf32>
    %cst_8 = arith.constant 9.99999974E-6 : f32
    %16 = vector.broadcast %cst_8 : f32 to vector<1x32xf32>
    %17 = arith.addf %13, %16 : vector<1x32xf32>
    %18 = math.rsqrt %17 : vector<1x32xf32>
    %19 = vector.broadcast %18 : vector<1x32xf32> to vector<8x32xf32>
    %20 = arith.mulf %15, %19 : vector<8x32xf32>
    %21 = vector.broadcast %1 : vector<1x32xf32> to vector<8x32xf32>
    %22 = arith.mulf %20, %21 : vector<8x32xf32>
    %23 = vector.broadcast %2 : vector<1x32xf32> to vector<8x32xf32>
    %24 = arith.addf %22, %23 : vector<8x32xf32>
    %25 = arith.mulf %24, %24 : vector<8x32xf32>
    %cst_9 = arith.constant dense<0.000000e+00> : vector<8xf32>
    %26 = vector.multi_reduction <add>, %25, %cst_9 [1] : vector<8x32xf32> to vector<8xf32>
    %27 = vector.shape_cast %26 : vector<8xf32> to vector<8x1xf32>
    %cst_10 = arith.constant 1.000000e-16 : f32
    %28 = vector.broadcast %cst_10 : f32 to vector<8x1xf32>
    %29 = arith.maximumf %27, %28 : vector<8x1xf32>
    %30 = math.rsqrt %29 : vector<8x1xf32>
    %31 = vector.broadcast %30 : vector<8x1xf32> to vector<8x32xf32>
    %32 = arith.mulf %24, %31 : vector<8x32xf32>
    %c0_11 = arith.constant 0 : index
    %c0_12 = arith.constant 0 : index
    %33 = vector.load %arg3[%c0_11, %c0_12] : memref<8x32xf32, #tpu.memory_space<vmem>>, vector<8x32xf32>
    tpu.vector_store %arg3[%c0_11, %c0_12], %32 {strides = array<i32>} : memref<8x32xf32, #tpu.memory_space<vmem>>, vector<8x32xf32>,
    return
  }
}

</mosaic_0001>

<bundles_post_ra>
// kernel: tpu_custom_call.1
= control target key start
LH: loop header
LB: loop body
LE: loop exit
PB: predicated region body
PF: predicated region fallthrough
CT: control target
= control target key end

     0   :  { %8 = vsyncpa [#allocation3], 0  ;;  %s180_s0 = inlined_call_operand.hbm [shape: f32[8,32], index: 0, kind: input, shape index: {}]   ;;  %s181_s1 = inlined_call_operand.vmem [shape: f32[1,32], index: 1, kind: input, shape index: {}]   ;;  %s182_s2 = inlined_call_operand.vmem [shape: f32[1,32], index: 2, kind: input, shape index: {}]   ;;  %s183_s3 = inlined_call_operand.hbm [shape: f32[8,32], index: 3, kind: output, shape index: {}]  }
   0x1   :  { %9 = vsyncpa [#allocation4], 0  ;;  %s142_s12 = smov [#allocation2]  }
   0x2   :  { %s16_s13 = sshll.u32 %s142_s12, 4  ;;  %s17_s13 = int_to_ptr.vmem [resolvable:$true] %s16_s13 }
   0x3   :  { %s106_s14 = scalar_lea.vmem %s17_s13, 128  ;;  %p111_p1 = scmp.lt.s32.totalorder %s17_s13, %s17_s13 }
   0x4   :  { %p107_p0 = scmp.ne.s32.totalorder %s17_s13, %s106_s14  ;;  %p112_p2 = scmp.lt.s32.totalorder %s106_s14, %s106_s14 }
   0x6   :  { %p113_p3 = por %p112_p2, %p111_p1 }
   0x8   :  { %p114_p4 = pnand %p113_p3, %p107_p0 }
   0xa   :  { %117 = shalt.err (!%p114_p4)
}
   0xb   :  { %19 = dma.hbm_to_vmem [thread:$0]  %s180_s0, 128, %s17_s13, [#allocation3]  }
   0xc   :  { %138 = dma.done.wait [#allocation3], 128  }
   0xd   :  { %139 = vsyncadd [#allocation3], 4294967168  ;;  %vm30_vm0 = vcmask 261120   ;;  %v27_v0 = vld [vmem:[#allocation2] sm:$0xff]  ;;  %s143_s20 = smov [#allocation5]  }
   0xe   :  { %v31_v1 = vsel %vm30_vm0, %v27_v0, 0.0  ;;  %v90_v21 = vld [vmem:[%s181_s1] ss:$0 sm:$0xff]  ;;  %s81_s21 = sshll.u32 %s143_s20, 4  ;;  %s82_s21 = int_to_ptr.vmem [resolvable:$true] %s81_s21 }
   0xf   :  { %v32_v2 = vrot.slane %v31_v1, 4  ;;  %v91_v23 = vld [vmem:[%s182_s2] ss:$0 sm:$0xff]  ;;  %s118_s1 = scalar_lea.vmem %s82_s21, 128  ;;  %p123_p6 = scmp.lt.s32.totalorder %s82_s21, %s82_s21 }
  0x10   :  { %p119_p5 = scmp.ne.s32.totalorder %s82_s21, %s118_s1  ;;  %p124_p7 = scmp.lt.s32.totalorder %s118_s1, %s118_s1 }
  0x11   :  { %v33_v3 = vadd.f32 %v32_v2, %v31_v1 }
  0x12   :  { %p125_p8 = por %p124_p7, %p123_p6 }
  0x13   :  { %v34_v4 = vrot.slane %v33_v3, 2 }
  0x14   :  { %p126_p9 = pnand %p125_p8, %p119_p5 }
  0x15   :  { %v35_v5 = vadd.f32 %v34_v4, %v33_v3 }
  0x17   :  { %v36_v6 = vrot.slane %v35_v5, 1 }
  0x19   :  { %v37_v7 = vadd.f32 %v36_v6, %v35_v5 }
  0x1b   :  { %v39_v8 = vmul.f32 0.125, %v37_v7 }
  0x1d   :  { %v40_v9 = vsub.f32 %v27_v0, %v39_v8 }
  0x1f   :  { %v41_v10 = vmul.f32 %v40_v9, %v40_v9 }
  0x21   :  { %v42_v11 = vsel %vm30_vm0, %v41_v10, 0.0 }
  0x22   :  { %v43_v12 = vrot.slane %v42_v11, 4 }
  0x24   :  { %v44_v13 = vadd.f32 %v43_v12, %v42_v11 }
  0x26   :  { %v45_v14 = vrot.slane %v44_v13, 2 }
  0x28   :  { %v46_v15 = vadd.f32 %v45_v14, %v44_v13 }
  0x2a   :  { %v47_v16 = vrot.slane %v46_v15, 1 }
  0x2c   :  { %v48_v17 = vadd.f32 %v47_v16, %v46_v15 }
  0x2e   :  { %v49_v18 = vmul.f32 0.125, %v48_v17 }
  0x30   :  { %v50_v19 = vadd.f32 1e-05, %v49_v18 }
  0x32   :  { %94 = vrsqrt.f32 %v50_v19 }
  0x3f   :  { %v95_v20 = vpop.eup %94 }
  0x40   :  { %v52_v22 = vmul.f32 %v95_v20, %v40_v9 }
  0x42   :  { %v59_v24 = vmul.f32 %v90_v21, %v52_v22 }
  0x44   :  { %v66_v25 = vadd.f32 %v91_v23, %v59_v24 }
  0x46   :  { %v67_v26 = vmul.f32 %v66_v25, %v66_v25 }
  0x48   :  { %v68_v27 = vsel %vm30_vm0, %v67_v26, 0.0 }
  0x49   :  { %69 = vadd.xlane.f32.xlu0 %v68_v27 }
  0xd2   :  { %v70_v28 = vpop.xlane.xlu0 %69 }
  0xd3   :  { %v71_v29 = vmax.f32 %v70_v28, 1e-16 }
  0xd5   :  { %96 = vrsqrt.f32 %v71_v29 }
  0xe2   :  { %v97_v30 = vpop.eup %96 }
  0xe3   :  { %v73_v31 = vmul.f32 %v97_v30, %v66_v25 }
  0xe5   :  { %74 = vst.msk [vmem:[#allocation5] sm:$0xff] %vm30_vm0, %v73_v31 }
  0xe6   :  { %129 = shalt.err (!%p126_p9)
}
  0xe7   :  { %84 = dma.vmem_to_hbm [thread:$0]  %s82_s21, 128, %s183_s3, [#allocation4]  }
  0xe8   :  { %140 = dma.done.wait [#allocation4], 128  }
  0xe9   :  { %141 = vsyncadd [#allocation4], 4294967168 }
  0xea   :  { %88 = vsyncpa [#allocation3], 1 }
  0xeb   :  { %89 = vsyncpa [#allocation4], 1 }

</bundles_post_ra>
